<compile_context>
chip_gen: v7x
topology: tpu7x:2x2x1
jax: 0.10.0
libtpu: 0.0.40
codegen_flags: <defaults>
</compile_context>

<pallas_src>
import functools

import jax
import jax.numpy as jnp
from jax.experimental import pallas as pl
from jax.experimental.pallas import tpu as pltpu


def _tree_sum(terms):
    """Balanced-tree sum of a Python list of equal-shape arrays (shortens dep chain)."""
    while len(terms) > 1:
        nxt = [terms[i] + terms[i + 1] for i in range(0, len(terms) - 1, 2)]
        if len(terms) % 2:
            nxt.append(terms[-1])
        terms = nxt
    return terms[0]


def _net_r1l_kernel(x_ref, w_ref, out_ref, *, n_in, n_hidden, n_out):
    """Single-invocation kernel (grid=()): whole forward pass in VMEM, MXU never used.

    x_ref   : (T, n_in, B)  time-major inputs, batch in lanes
    w_ref   : (8*(n_in+2*n_hidden+2), B) packed weight slab; block v (rows 8v..8v+7) is
              one column vector (of W_ih / W_hh / W_ro or a bias) already broadcast
              along the lane (batch) dimension
    out_ref : (n_out, B)    tanh(readout(h_T)) in batch-in-lanes layout
    """
    T = x_ref.shape[0]
    H, nout = n_hidden, n_out

    # --- hoist every loop-invariant weight block exactly once (aligned static slices;
    #     nothing below the time loop re-reads refs or re-broadcasts) -----------------
    def wvec(idx, length):                       # (length, B), already lane-broadcast
        return w_ref[8 * idx:8 * idx + length, :]

    wih_b = [wvec(i, H) for i in range(n_in)]                    # columns of W_ih
    whh_b = [wvec(n_in + k, H) for k in range(H)]                # columns of W_hh
    bias_b = wvec(n_in + H, H)                                   # b_ih + b_hh
    wro_b = [wvec(n_in + H + 1 + j, nout) for j in range(H)]     # columns of W_ro
    bro_b = wvec(n_in + 2 * H + 1, nout)                         # b_ro

    # --- prologue: input projection for all timesteps, entirely off the serial chain
    #     (depends only on x); pure VPU multiply-adds, already in (H, B) layout -------
    pre = []
    for t in range(T):
        xt = x_ref[t]                                            # (n_in, B), one vreg
        pre.append(_tree_sum(
            [bias_b] + [wih_b[i] * xt[i:i + 1, :] for i in range(n_in)]))

    # --- serial recurrence: only H broadcast-madds + relu on the dependency chain ----
    h = jnp.zeros((H, x_ref.shape[2]), jnp.float32)              # h_0 = 0, (H, B)
    for t in range(T):
        z = _tree_sum([pre[t]] + [whh_b[k] * h[k:k + 1, :] for k in range(H)])
        h = jnp.maximum(z, 0.0)                                  # nonlinearity='relu'

    # --- epilogue: readout on VPU, tanh on EUP ----------------------------------------
    logits = _tree_sum([bro_b] + [wro_b[j] * h[j:j + 1, :] for j in range(H)])
    out_ref[...] = jnp.tanh(logits).astype(out_ref.dtype)


def net_r1l_forward(x, w_ih, w_hh, b_ih, b_hh, w_ro, b_ro):
    """x: (B, T, nin) batch-first, like the PyTorch module. Returns (B, nout)."""
    B, T, nin = x.shape
    H = w_ih.shape[0]       # torch RNN.weight_ih_l0 is (H, nin)
    nout = w_ro.shape[0]    # torch Linear.weight is (nout, H)

    # One fused layout op on the input: (B,T,nin) -> (T,nin,B), batch in lanes, so every
    # per-step operand inside the kernel is already in the (H, B) state layout.
    x_t = jnp.transpose(x, (1, 2, 0)).astype(jnp.float32)        # (T, nin, B)

    # Pack all five weight operands into ONE pre-padded, pre-lane-broadcast slab
    # (2 input DMAs total instead of 6).  Each needed column vector gets its own
    # 8-sublane-aligned (8, B) block so the kernel only does aligned static slices.
    def blk(v):
        col = jnp.zeros((8,), jnp.float32).at[: v.shape[0]].set(v.astype(jnp.float32))
        return jnp.broadcast_to(col[:, None], (8, B))

    blocks = ([blk(w_ih[:, i]) for i in range(nin)]              # W_ih columns
              + [blk(w_hh[:, k]) for k in range(H)]              # W_hh columns
              + [blk(b_ih + b_hh)]                               # bias pre-summed
              + [blk(w_ro[:, j]) for j in range(H)]              # W_ro columns
              + [blk(b_ro)])                                     # readout bias
    slab = jnp.concatenate(blocks, axis=0)                       # (8*(nin+2H+2), B)

    kernel = functools.partial(_net_r1l_kernel, n_in=nin, n_hidden=H, n_out=nout)
    vmem = pltpu.MemorySpace.VMEM
    out_t = pl.pallas_call(
        kernel,
        out_shape=jax.ShapeDtypeStruct((nout, B), jnp.float32),
        in_specs=[pl.BlockSpec(memory_space=vmem)] * 2,          # full arrays, no grid
        out_specs=pl.BlockSpec(memory_space=vmem),
    )(x_t, slab)

    # (nout, B) -> (B, nout): 96-byte layout flip, kept in the wrapper to avoid an
    # in-kernel XLU transpose on a sub-tile array.
    return jnp.transpose(out_t)


def _reference(x, w_ih, w_hh, b_ih, b_hh, w_ro, b_ro):
    """Pure-JAX reference matching torch.nn.RNN(relu, batch_first) + tanh(Linear)."""
    B, T, _ = x.shape
    h = jnp.zeros((B, w_ih.shape[0]), jnp.float32)
    for t in range(T):
        h = jax.nn.relu(x[:, t, :] @ w_ih.T + b_ih + h @ w_hh.T + b_hh)
    return jnp.tanh(h @ w_ro.T + b_ro)


if __name__ == "__main__":
    # Small shapes consistent with the module: n_hidden = 5 (from the test file).
    B, T, nin, n_hidden, nout = 8, 8, 4, 5, 3

    key = jax.random.PRNGKey(0)
    kx, k1, k2, k3, k4, k5, k6 = jax.random.split(key, 7)

    scale = 1.0 / jnp.sqrt(jnp.float32(n_hidden))  # torch default uniform bound
    x = jax.random.normal(kx, (B, T, nin), jnp.float32)
    w_ih = jax.random.uniform(k1, (n_hidden, nin), jnp.float32, -scale, scale)
    w_hh = jax.random.uniform(k2, (n_hidden, n_hidden), jnp.float32, -scale, scale)
    b_ih = jax.random.uniform(k3, (n_hidden,), jnp.float32, -scale, scale)
    b_hh = jax.random.uniform(k4, (n_hidden,), jnp.float32, -scale, scale)
    w_ro = jax.random.uniform(k5, (nout, n_hidden), jnp.float32, -scale, scale)
    b_ro = jax.random.uniform(k6, (nout,), jnp.float32, -scale, scale)

    fwd = jax.jit(net_r1l_forward)
    out = jax.block_until_ready(fwd(x, w_ih, w_hh, b_ih, b_hh, w_ro, b_ro))

    ref = _reference(x, w_ih, w_hh, b_ih, b_hh, w_ro, b_ro)
    assert out.shape == (B, nout), out.shape
    assert jnp.allclose(out, ref, atol=1e-5, rtol=1e-5), (out, ref)

    print("KERNEL_OK")
</pallas_src>

<mosaic_0001>
module attributes {stable_mosaic.version = 11 : i64} {
  func.func @_net_r1l_kernel(%arg0: memref<8x4x8xf32, #tpu.memory_space<vmem>>, %arg1: memref<128x8xf32, #tpu.memory_space<vmem>>, %arg2: memref<3x8xf32, #tpu.memory_space<vmem>>) attributes {dimension_semantics = [], scalar_prefetch = 0 : i64, scratch_operands = 0 : i64, tpu.core_type = #tpu.core_type<tc>} {
    %c0 = arith.constant 0 : index
    %c0_0 = arith.constant 0 : index
    %0 = vector.load %arg1[%c0, %c0_0] : memref<128x8xf32, #tpu.memory_space<vmem>>, vector<5x8xf32>
    %c8 = arith.constant 8 : index
    %c0_1 = arith.constant 0 : index
    %1 = vector.load %arg1[%c8, %c0_1] : memref<128x8xf32, #tpu.memory_space<vmem>>, vector<5x8xf32>
    %c16 = arith.constant 16 : index
    %c0_2 = arith.constant 0 : index
    %2 = vector.load %arg1[%c16, %c0_2] : memref<128x8xf32, #tpu.memory_space<vmem>>, vector<5x8xf32>
    %c24 = arith.constant 24 : index
    %c0_3 = arith.constant 0 : index
    %3 = vector.load %arg1[%c24, %c0_3] : memref<128x8xf32, #tpu.memory_space<vmem>>, vector<5x8xf32>
    %c32 = arith.constant 32 : index
    %c0_4 = arith.constant 0 : index
    %4 = vector.load %arg1[%c32, %c0_4] : memref<128x8xf32, #tpu.memory_space<vmem>>, vector<5x8xf32>
    %c40 = arith.constant 40 : index
    %c0_5 = arith.constant 0 : index
    %5 = vector.load %arg1[%c40, %c0_5] : memref<128x8xf32, #tpu.memory_space<vmem>>, vector<5x8xf32>
    %c48 = arith.constant 48 : index
    %c0_6 = arith.constant 0 : index
    %6 = vector.load %arg1[%c48, %c0_6] : memref<128x8xf32, #tpu.memory_space<vmem>>, vector<5x8xf32>
    %c56 = arith.constant 56 : index
    %c0_7 = arith.constant 0 : index
    %7 = vector.load %arg1[%c56, %c0_7] : memref<128x8xf32, #tpu.memory_space<vmem>>, vector<5x8xf32>
    %c64 = arith.constant 64 : index
    %c0_8 = arith.constant 0 : index
    %8 = vector.load %arg1[%c64, %c0_8] : memref<128x8xf32, #tpu.memory_space<vmem>>, vector<5x8xf32>
    %c72 = arith.constant 72 : index
    %c0_9 = arith.constant 0 : index
    %9 = vector.load %arg1[%c72, %c0_9] : memref<128x8xf32, #tpu.memory_space<vmem>>, vector<5x8xf32>
    %c80 = arith.constant 80 : index
    %c0_10 = arith.constant 0 : index
    %10 = vector.load %arg1[%c80, %c0_10] : memref<128x8xf32, #tpu.memory_space<vmem>>, vector<3x8xf32>
    %c88 = arith.constant 88 : index
    %c0_11 = arith.constant 0 : index
    %11 = vector.load %arg1[%c88, %c0_11] : memref<128x8xf32, #tpu.memory_space<vmem>>, vector<3x8xf32>
    %c96 = arith.constant 96 : index
    %c0_12 = arith.constant 0 : index
    %12 = vector.load %arg1[%c96, %c0_12] : memref<128x8xf32, #tpu.memory_space<vmem>>, vector<3x8xf32>
    %c104 = arith.constant 104 : index
    %c0_13 = arith.constant 0 : index
    %13 = vector.load %arg1[%c104, %c0_13] : memref<128x8xf32, #tpu.memory_space<vmem>>, vector<3x8xf32>
    %c112 = arith.constant 112 : index
    %c0_14 = arith.constant 0 : index
    %14 = vector.load %arg1[%c112, %c0_14] : memref<128x8xf32, #tpu.memory_space<vmem>>, vector<3x8xf32>
    %c120 = arith.constant 120 : index
    %c0_15 = arith.constant 0 : index
    %15 = vector.load %arg1[%c120, %c0_15] : memref<128x8xf32, #tpu.memory_space<vmem>>, vector<3x8xf32>
    %c0_16 = arith.constant 0 : index
    %c0_17 = arith.constant 0 : index
    %c0_18 = arith.constant 0 : index
    %16 = vector.load %arg0[%c0_16, %c0_17, %c0_18] : memref<8x4x8xf32, #tpu.memory_space<vmem>>, vector<1x4x8xf32>
    %17 = vector.shape_cast %16 : vector<1x4x8xf32> to vector<4x8xf32>
    %18 = vector.extract_strided_slice %17 {offsets = [0, 0], sizes = [1, 8], strides = [1, 1]} : vector<4x8xf32> to vector<1x8xf32>
    %19 = vector.broadcast %18 : vector<1x8xf32> to vector<5x8xf32>
    %20 = arith.mulf %0, %19 : vector<5x8xf32>
    %21 = vector.extract_strided_slice %17 {offsets = [1, 0], sizes = [1, 8], strides = [1, 1]} : vector<4x8xf32> to vector<1x8xf32>
    %22 = vector.broadcast %21 : vector<1x8xf32> to vector<5x8xf32>
    %23 = arith.mulf %1, %22 : vector<5x8xf32>
    %24 = vector.extract_strided_slice %17 {offsets = [2, 0], sizes = [1, 8], strides = [1, 1]} : vector<4x8xf32> to vector<1x8xf32>
    %25 = vector.broadcast %24 : vector<1x8xf32> to vector<5x8xf32>
    %26 = arith.mulf %2, %25 : vector<5x8xf32>
    %27 = vector.extract_strided_slice %17 {offsets = [3, 0], sizes = [1, 8], strides = [1, 1]} : vector<4x8xf32> to vector<1x8xf32>
    %28 = vector.broadcast %27 : vector<1x8xf32> to vector<5x8xf32>
    %29 = arith.mulf %3, %28 : vector<5x8xf32>
    %30 = arith.addf %9, %20 : vector<5x8xf32>
    %31 = arith.addf %23, %26 : vector<5x8xf32>
    %32 = arith.addf %30, %31 : vector<5x8xf32>
    %33 = arith.addf %32, %29 : vector<5x8xf32>
    %c1 = arith.constant 1 : index
    %c0_19 = arith.constant 0 : index
    %c0_20 = arith.constant 0 : index
    %34 = vector.load %arg0[%c1, %c0_19, %c0_20] : memref<8x4x8xf32, #tpu.memory_space<vmem>>, vector<1x4x8xf32>
    %35 = vector.shape_cast %34 : vector<1x4x8xf32> to vector<4x8xf32>
    %36 = vector.extract_strided_slice %35 {offsets = [0, 0], sizes = [1, 8], strides = [1, 1]} : vector<4x8xf32> to vector<1x8xf32>
    %37 = vector.broadcast %36 : vector<1x8xf32> to vector<5x8xf32>
    %38 = arith.mulf %0, %37 : vector<5x8xf32>
    %39 = vector.extract_strided_slice %35 {offsets = [1, 0], sizes = [1, 8], strides = [1, 1]} : vector<4x8xf32> to vector<1x8xf32>
    %40 = vector.broadcast %39 : vector<1x8xf32> to vector<5x8xf32>
    %41 = arith.mulf %1, %40 : vector<5x8xf32>
    %42 = vector.extract_strided_slice %35 {offsets = [2, 0], sizes = [1, 8], strides = [1, 1]} : vector<4x8xf32> to vector<1x8xf32>
    %43 = vector.broadcast %42 : vector<1x8xf32> to vector<5x8xf32>
    %44 = arith.mulf %2, %43 : vector<5x8xf32>
    %45 = vector.extract_strided_slice %35 {offsets = [3, 0], sizes = [1, 8], strides = [1, 1]} : vector<4x8xf32> to vector<1x8xf32>
    %46 = vector.broadcast %45 : vector<1x8xf32> to vector<5x8xf32>
    %47 = arith.mulf %3, %46 : vector<5x8xf32>
    %48 = arith.addf %9, %38 : vector<5x8xf32>
    %49 = arith.addf %41, %44 : vector<5x8xf32>
    %50 = arith.addf %48, %49 : vector<5x8xf32>
    %51 = arith.addf %50, %47 : vector<5x8xf32>
    %c2 = arith.constant 2 : index
    %c0_21 = arith.constant 0 : index
    %c0_22 = arith.constant 0 : index
    %52 = vector.load %arg0[%c2, %c0_21, %c0_22] : memref<8x4x8xf32, #tpu.memory_space<vmem>>, vector<1x4x8xf32>
    %53 = vector.shape_cast %52 : vector<1x4x8xf32> to vector<4x8xf32>
    %54 = vector.extract_strided_slice %53 {offsets = [0, 0], sizes = [1, 8], strides = [1, 1]} : vector<4x8xf32> to vector<1x8xf32>
    %55 = vector.broadcast %54 : vector<1x8xf32> to vector<5x8xf32>
    %56 = arith.mulf %0, %55 : vector<5x8xf32>
    %57 = vector.extract_strided_slice %53 {offsets = [1, 0], sizes = [1, 8], strides = [1, 1]} : vector<4x8xf32> to vector<1x8xf32>
    %58 = vector.broadcast %57 : vector<1x8xf32> to vector<5x8xf32>
    %59 = arith.mulf %1, %58 : vector<5x8xf32>
    %60 = vector.extract_strided_slice %53 {offsets = [2, 0], sizes = [1, 8], strides = [1, 1]} : vector<4x8xf32> to vector<1x8xf32>
    %61 = vector.broadcast %60 : vector<1x8xf32> to vector<5x8xf32>
    %62 = arith.mulf %2, %61 : vector<5x8xf32>
    %63 = vector.extract_strided_slice %53 {offsets = [3, 0], sizes = [1, 8], strides = [1, 1]} : vector<4x8xf32> to vector<1x8xf32>
    %64 = vector.broadcast %63 : vector<1x8xf32> to vector<5x8xf32>
    %65 = arith.mulf %3, %64 : vector<5x8xf32>
    %66 = arith.addf %9, %56 : vector<5x8xf32>
    %67 = arith.addf %59, %62 : vector<5x8xf32>
    %68 = arith.addf %66, %67 : vector<5x8xf32>
    %69 = arith.addf %68, %65 : vector<5x8xf32>
    %c3 = arith.constant 3 : index
    %c0_23 = arith.constant 0 : index
    %c0_24 = arith.constant 0 : index
    %70 = vector.load %arg0[%c3, %c0_23, %c0_24] : memref<8x4x8xf32, #tpu.memory_space<vmem>>, vector<1x4x8xf32>
    %71 = vector.shape_cast %70 : vector<1x4x8xf32> to vector<4x8xf32>
    %72 = vector.extract_strided_slice %71 {offsets = [0, 0], sizes = [1, 8], strides = [1, 1]} : vector<4x8xf32> to vector<1x8xf32>
    %73 = vector.broadcast %72 : vector<1x8xf32> to vector<5x8xf32>
    %74 = arith.mulf %0, %73 : vector<5x8xf32>
    %75 = vector.extract_strided_slice %71 {offsets = [1, 0], sizes = [1, 8], strides = [1, 1]} : vector<4x8xf32> to vector<1x8xf32>
    %76 = vector.broadcast %75 : vector<1x8xf32> to vector<5x8xf32>
    %77 = arith.mulf %1, %76 : vector<5x8xf32>
    %78 = vector.extract_strided_slice %71 {offsets = [2, 0], sizes = [1, 8], strides = [1, 1]} : vector<4x8xf32> to vector<1x8xf32>
    %79 = vector.broadcast %78 : vector<1x8xf32> to vector<5x8xf32>
    %80 = arith.mulf %2, %79 : vector<5x8xf32>
    %81 = vector.extract_strided_slice %71 {offsets = [3, 0], sizes = [1, 8], strides = [1, 1]} : vector<4x8xf32> to vector<1x8xf32>
    %82 = vector.broadcast %81 : vector<1x8xf32> to vector<5x8xf32>
    %83 = arith.mulf %3, %82 : vector<5x8xf32>
    %84 = arith.addf %9, %74 : vector<5x8xf32>
    %85 = arith.addf %77, %80 : vector<5x8xf32>
    %86 = arith.addf %84, %85 : vector<5x8xf32>
    %87 = arith.addf %86, %83 : vector<5x8xf32>
    %c4 = arith.constant 4 : index
    %c0_25 = arith.constant 0 : index
    %c0_26 = arith.constant 0 : index
    %88 = vector.load %arg0[%c4, %c0_25, %c0_26] : memref<8x4x8xf32, #tpu.memory_space<vmem>>, vector<1x4x8xf32>
    %89 = vector.shape_cast %88 : vector<1x4x8xf32> to vector<4x8xf32>
    %90 = vector.extract_strided_slice %89 {offsets = [0, 0], sizes = [1, 8], strides = [1, 1]} : vector<4x8xf32> to vector<1x8xf32>
    %91 = vector.broadcast %90 : vector<1x8xf32> to vector<5x8xf32>
    %92 = arith.mulf %0, %91 : vector<5x8xf32>
    %93 = vector.extract_strided_slice %89 {offsets = [1, 0], sizes = [1, 8], strides = [1, 1]} : vector<4x8xf32> to vector<1x8xf32>
    %94 = vector.broadcast %93 : vector<1x8xf32> to vector<5x8xf32>
    %95 = arith.mulf %1, %94 : vector<5x8xf32>
    %96 = vector.extract_strided_slice %89 {offsets = [2, 0], sizes = [1, 8], strides = [1, 1]} : vector<4x8xf32> to vector<1x8xf32>
    %97 = vector.broadcast %96 : vector<1x8xf32> to vector<5x8xf32>
    %98 = arith.mulf %2, %97 : vector<5x8xf32>
    %99 = vector.extract_strided_slice %89 {offsets = [3, 0], sizes = [1, 8], strides = [1, 1]} : vector<4x8xf32> to vector<1x8xf32>
    %100 = vector.broadcast %99 : vector<1x8xf32> to vector<5x8xf32>
    %101 = arith.mulf %3, %100 : vector<5x8xf32>
    %102 = arith.addf %9, %92 : vector<5x8xf32>
    %103 = arith.addf %95, %98 : vector<5x8xf32>
    %104 = arith.addf %102, %103 : vector<5x8xf32>
    %105 = arith.addf %104, %101 : vector<5x8xf32>
    %c5 = arith.constant 5 : index
    %c0_27 = arith.constant 0 : index
    %c0_28 = arith.constant 0 : index
    %106 = vector.load %arg0[%c5, %c0_27, %c0_28] : memref<8x4x8xf32, #tpu.memory_space<vmem>>, vector<1x4x8xf32>
    %107 = vector.shape_cast %106 : vector<1x4x8xf32> to vector<4x8xf32>
    %108 = vector.extract_strided_slice %107 {offsets = [0, 0], sizes = [1, 8], strides = [1, 1]} : vector<4x8xf32> to vector<1x8xf32>
    %109 = vector.broadcast %108 : vector<1x8xf32> to vector<5x8xf32>
    %110 = arith.mulf %0, %109 : vector<5x8xf32>
    %111 = vector.extract_strided_slice %107 {offsets = [1, 0], sizes = [1, 8], strides = [1, 1]} : vector<4x8xf32> to vector<1x8xf32>
    %112 = vector.broadcast %111 : vector<1x8xf32> to vector<5x8xf32>
    %113 = arith.mulf %1, %112 : vector<5x8xf32>
    %114 = vector.extract_strided_slice %107 {offsets = [2, 0], sizes = [1, 8], strides = [1, 1]} : vector<4x8xf32> to vector<1x8xf32>
    %115 = vector.broadcast %114 : vector<1x8xf32> to vector<5x8xf32>
    %116 = arith.mulf %2, %115 : vector<5x8xf32>
    %117 = vector.extract_strided_slice %107 {offsets = [3, 0], sizes = [1, 8], strides = [1, 1]} : vector<4x8xf32> to vector<1x8xf32>
    %118 = vector.broadcast %117 : vector<1x8xf32> to vector<5x8xf32>
    %119 = arith.mulf %3, %118 : vector<5x8xf32>
    %120 = arith.addf %9, %110 : vector<5x8xf32>
    %121 = arith.addf %113, %116 : vector<5x8xf32>
    %122 = arith.addf %120, %121 : vector<5x8xf32>
    %123 = arith.addf %122, %119 : vector<5x8xf32>
    %c6 = arith.constant 6 : index
    %c0_29 = arith.constant 0 : index
    %c0_30 = arith.constant 0 : index
    %124 = vector.load %arg0[%c6, %c0_29, %c0_30] : memref<8x4x8xf32, #tpu.memory_space<vmem>>, vector<1x4x8xf32>
    %125 = vector.shape_cast %124 : vector<1x4x8xf32> to vector<4x8xf32>
    %126 = vector.extract_strided_slice %125 {offsets = [0, 0], sizes = [1, 8], strides = [1, 1]} : vector<4x8xf32> to vector<1x8xf32>
    %127 = vector.broadcast %126 : vector<1x8xf32> to vector<5x8xf32>
    %128 = arith.mulf %0, %127 : vector<5x8xf32>
    %129 = vector.extract_strided_slice %125 {offsets = [1, 0], sizes = [1, 8], strides = [1, 1]} : vector<4x8xf32> to vector<1x8xf32>
    %130 = vector.broadcast %129 : vector<1x8xf32> to vector<5x8xf32>
    %131 = arith.mulf %1, %130 : vector<5x8xf32>
    %132 = vector.extract_strided_slice %125 {offsets = [2, 0], sizes = [1, 8], strides = [1, 1]} : vector<4x8xf32> to vector<1x8xf32>
    %133 = vector.broadcast %132 : vector<1x8xf32> to vector<5x8xf32>
    %134 = arith.mulf %2, %133 : vector<5x8xf32>
    %135 = vector.extract_strided_slice %125 {offsets = [3, 0], sizes = [1, 8], strides = [1, 1]} : vector<4x8xf32> to vector<1x8xf32>
    %136 = vector.broadcast %135 : vector<1x8xf32> to vector<5x8xf32>
    %137 = arith.mulf %3, %136 : vector<5x8xf32>
    %138 = arith.addf %9, %128 : vector<5x8xf32>
    %139 = arith.addf %131, %134 : vector<5x8xf32>
    %140 = arith.addf %138, %139 : vector<5x8xf32>
    %141 = arith.addf %140, %137 : vector<5x8xf32>
    %c7 = arith.constant 7 : index
    %c0_31 = arith.constant 0 : index
    %c0_32 = arith.constant 0 : index
    %142 = vector.load %arg0[%c7, %c0_31, %c0_32] : memref<8x4x8xf32, #tpu.memory_space<vmem>>, vector<1x4x8xf32>
    %143 = vector.shape_cast %142 : vector<1x4x8xf32> to vector<4x8xf32>
    %144 = vector.extract_strided_slice %143 {offsets = [0, 0], sizes = [1, 8], strides = [1, 1]} : vector<4x8xf32> to vector<1x8xf32>
    %145 = vector.broadcast %144 : vector<1x8xf32> to vector<5x8xf32>
    %146 = arith.mulf %0, %145 : vector<5x8xf32>
    %147 = vector.extract_strided_slice %143 {offsets = [1, 0], sizes = [1, 8], strides = [1, 1]} : vector<4x8xf32> to vector<1x8xf32>
    %148 = vector.broadcast %147 : vector<1x8xf32> to vector<5x8xf32>
    %149 = arith.mulf %1, %148 : vector<5x8xf32>
    %150 = vector.extract_strided_slice %143 {offsets = [2, 0], sizes = [1, 8], strides = [1, 1]} : vector<4x8xf32> to vector<1x8xf32>
    %151 = vector.broadcast %150 : vector<1x8xf32> to vector<5x8xf32>
    %152 = arith.mulf %2, %151 : vector<5x8xf32>
    %153 = vector.extract_strided_slice %143 {offsets = [3, 0], sizes = [1, 8], strides = [1, 1]} : vector<4x8xf32> to vector<1x8xf32>
    %154 = vector.broadcast %153 : vector<1x8xf32> to vector<5x8xf32>
    %155 = arith.mulf %3, %154 : vector<5x8xf32>
    %156 = arith.addf %9, %146 : vector<5x8xf32>
    %157 = arith.addf %149, %152 : vector<5x8xf32>
    %158 = arith.addf %156, %157 : vector<5x8xf32>
    %159 = arith.addf %158, %155 : vector<5x8xf32>
    %cst = arith.constant 0.000000e+00 : f32
    %160 = vector.broadcast %cst : f32 to vector<5x8xf32>
    %161 = vector.extract_strided_slice %160 {offsets = [0, 0], sizes = [1, 8], strides = [1, 1]} : vector<5x8xf32> to vector<1x8xf32>
    %162 = vector.broadcast %161 : vector<1x8xf32> to vector<5x8xf32>
    %163 = arith.mulf %4, %162 : vector<5x8xf32>
    %164 = vector.extract_strided_slice %160 {offsets = [1, 0], sizes = [1, 8], strides = [1, 1]} : vector<5x8xf32> to vector<1x8xf32>
    %165 = vector.broadcast %164 : vector<1x8xf32> to vector<5x8xf32>
    %166 = arith.mulf %5, %165 : vector<5x8xf32>
    %167 = vector.extract_strided_slice %160 {offsets = [2, 0], sizes = [1, 8], strides = [1, 1]} : vector<5x8xf32> to vector<1x8xf32>
    %168 = vector.broadcast %167 : vector<1x8xf32> to vector<5x8xf32>
    %169 = arith.mulf %6, %168 : vector<5x8xf32>
    %170 = vector.extract_strided_slice %160 {offsets = [3, 0], sizes = [1, 8], strides = [1, 1]} : vector<5x8xf32> to vector<1x8xf32>
    %171 = vector.broadcast %170 : vector<1x8xf32> to vector<5x8xf32>
    %172 = arith.mulf %7, %171 : vector<5x8xf32>
    %173 = vector.extract_strided_slice %160 {offsets = [4, 0], sizes = [1, 8], strides = [1, 1]} : vector<5x8xf32> to vector<1x8xf32>
    %174 = vector.broadcast %173 : vector<1x8xf32> to vector<5x8xf32>
    %175 = arith.mulf %8, %174 : vector<5x8xf32>
    %176 = arith.addf %33, %163 : vector<5x8xf32>
    %177 = arith.addf %166, %169 : vector<5x8xf32>
    %178 = arith.addf %172, %175 : vector<5x8xf32>
    %179 = arith.addf %176, %177 : vector<5x8xf32>
    %180 = arith.addf %179, %178 : vector<5x8xf32>
    %cst_33 = arith.constant 0.000000e+00 : f32
    %181 = vector.broadcast %cst_33 : f32 to vector<5x8xf32>
    %182 = arith.maximumf %180, %181 : vector<5x8xf32>
    %183 = vector.extract_strided_slice %182 {offsets = [0, 0], sizes = [1, 8], strides = [1, 1]} : vector<5x8xf32> to vector<1x8xf32>
    %184 = vector.broadcast %183 : vector<1x8xf32> to vector<5x8xf32>
    %185 = arith.mulf %4, %184 : vector<5x8xf32>
    %186 = vector.extract_strided_slice %182 {offsets = [1, 0], sizes = [1, 8], strides = [1, 1]} : vector<5x8xf32> to vector<1x8xf32>
    %187 = vector.broadcast %186 : vector<1x8xf32> to vector<5x8xf32>
    %188 = arith.mulf %5, %187 : vector<5x8xf32>
    %189 = vector.extract_strided_slice %182 {offsets = [2, 0], sizes = [1, 8], strides = [1, 1]} : vector<5x8xf32> to vector<1x8xf32>
    %190 = vector.broadcast %189 : vector<1x8xf32> to vector<5x8xf32>
    %191 = arith.mulf %6, %190 : vector<5x8xf32>
    %192 = vector.extract_strided_slice %182 {offsets = [3, 0], sizes = [1, 8], strides = [1, 1]} : vector<5x8xf32> to vector<1x8xf32>
    %193 = vector.broadcast %192 : vector<1x8xf32> to vector<5x8xf32>
    %194 = arith.mulf %7, %193 : vector<5x8xf32>
    %195 = vector.extract_strided_slice %182 {offsets = [4, 0], sizes = [1, 8], strides = [1, 1]} : vector<5x8xf32> to vector<1x8xf32>
    %196 = vector.broadcast %195 : vector<1x8xf32> to vector<5x8xf32>
    %197 = arith.mulf %8, %196 : vector<5x8xf32>
    %198 = arith.addf %51, %185 : vector<5x8xf32>
    %199 = arith.addf %188, %191 : vector<5x8xf32>
    %200 = arith.addf %194, %197 : vector<5x8xf32>
    %201 = arith.addf %198, %199 : vector<5x8xf32>
    %202 = arith.addf %201, %200 : vector<5x8xf32>
    %cst_34 = arith.constant 0.000000e+00 : f32
    %203 = vector.broadcast %cst_34 : f32 to vector<5x8xf32>
    %204 = arith.maximumf %202, %203 : vector<5x8xf32>
    %205 = vector.extract_strided_slice %204 {offsets = [0, 0], sizes = [1, 8], strides = [1, 1]} : vector<5x8xf32> to vector<1x8xf32>
    %206 = vector.broadcast %205 : vector<1x8xf32> to vector<5x8xf32>
    %207 = arith.mulf %4, %206 : vector<5x8xf32>
    %208 = vector.extract_strided_slice %204 {offsets = [1, 0], sizes = [1, 8], strides = [1, 1]} : vector<5x8xf32> to vector<1x8xf32>
    %209 = vector.broadcast %208 : vector<1x8xf32> to vector<5x8xf32>
    %210 = arith.mulf %5, %209 : vector<5x8xf32>
    %211 = vector.extract_strided_slice %204 {offsets = [2, 0], sizes = [1, 8], strides = [1, 1]} : vector<5x8xf32> to vector<1x8xf32>
    %212 = vector.broadcast %211 : vector<1x8xf32> to vector<5x8xf32>
    %213 = arith.mulf %6, %212 : vector<5x8xf32>
    %214 = vector.extract_strided_slice %204 {offsets = [3, 0], sizes = [1, 8], strides = [1, 1]} : vector<5x8xf32> to vector<1x8xf32>
    %215 = vector.broadcast %214 : vector<1x8xf32> to vector<5x8xf32>
    %216 = arith.mulf %7, %215 : vector<5x8xf32>
    %217 = vector.extract_strided_slice %204 {offsets = [4, 0], sizes = [1, 8], strides = [1, 1]} : vector<5x8xf32> to vector<1x8xf32>
    %218 = vector.broadcast %217 : vector<1x8xf32> to vector<5x8xf32>
    %219 = arith.mulf %8, %218 : vector<5x8xf32>
    %220 = arith.addf %69, %207 : vector<5x8xf32>
    %221 = arith.addf %210, %213 : vector<5x8xf32>
    %222 = arith.addf %216, %219 : vector<5x8xf32>
    %223 = arith.addf %220, %221 : vector<5x8xf32>
    %224 = arith.addf %223, %222 : vector<5x8xf32>
    %cst_35 = arith.constant 0.000000e+00 : f32
    %225 = vector.broadcast %cst_35 : f32 to vector<5x8xf32>
    %226 = arith.maximumf %224, %225 : vector<5x8xf32>
    %227 = vector.extract_strided_slice %226 {offsets = [0, 0], sizes = [1, 8], strides = [1, 1]} : vector<5x8xf32> to vector<1x8xf32>
    %228 = vector.broadcast %227 : vector<1x8xf32> to vector<5x8xf32>
    %229 = arith.mulf %4, %228 : vector<5x8xf32>
    %230 = vector.extract_strided_slice %226 {offsets = [1, 0], sizes = [1, 8], strides = [1, 1]} : vector<5x8xf32> to vector<1x8xf32>
    %231 = vector.broadcast %230 : vector<1x8xf32> to vector<5x8xf32>
    %232 = arith.mulf %5, %231 : vector<5x8xf32>
    %233 = vector.extract_strided_slice %226 {offsets = [2, 0], sizes = [1, 8], strides = [1, 1]} : vector<5x8xf32> to vector<1x8xf32>
    %234 = vector.broadcast %233 : vector<1x8xf32> to vector<5x8xf32>
    %235 = arith.mulf %6, %234 : vector<5x8xf32>
    %236 = vector.extract_strided_slice %226 {offsets = [3, 0], sizes = [1, 8], strides = [1, 1]} : vector<5x8xf32> to vector<1x8xf32>
    %237 = vector.broadcast %236 : vector<1x8xf32> to vector<5x8xf32>
    %238 = arith.mulf %7, %237 : vector<5x8xf32>
    %239 = vector.extract_strided_slice %226 {offsets = [4, 0], sizes = [1, 8], strides = [1, 1]} : vector<5x8xf32> to vector<1x8xf32>
    %240 = vector.broadcast %239 : vector<1x8xf32> to vector<5x8xf32>
    %241 = arith.mulf %8, %240 : vector<5x8xf32>
    %242 = arith.addf %87, %229 : vector<5x8xf32>
    %243 = arith.addf %232, %235 : vector<5x8xf32>
    %244 = arith.addf %238, %241 : vector<5x8xf32>
    %245 = arith.addf %242, %243 : vector<5x8xf32>
    %246 = arith.addf %245, %244 : vector<5x8xf32>
    %cst_36 = arith.constant 0.000000e+00 : f32
    %247 = vector.broadcast %cst_36 : f32 to vector<5x8xf32>
    %248 = arith.maximumf %246, %247 : vector<5x8xf32>
    %249 = vector.extract_strided_slice %248 {offsets = [0, 0], sizes = [1, 8], strides = [1, 1]} : vector<5x8xf32> to vector<1x8xf32>
    %250 = vector.broadcast %249 : vector<1x8xf32> to vector<5x8xf32>
    %251 = arith.mulf %4, %250 : vector<5x8xf32>
    %252 = vector.extract_strided_slice %248 {offsets = [1, 0], sizes = [1, 8], strides = [1, 1]} : vector<5x8xf32> to vector<1x8xf32>
    %253 = vector.broadcast %252 : vector<1x8xf32> to vector<5x8xf32>
    %254 = arith.mulf %5, %253 : vector<5x8xf32>
    %255 = vector.extract_strided_slice %248 {offsets = [2, 0], sizes = [1, 8], strides = [1, 1]} : vector<5x8xf32> to vector<1x8xf32>
    %256 = vector.broadcast %255 : vector<1x8xf32> to vector<5x8xf32>
    %257 = arith.mulf %6, %256 : vector<5x8xf32>
    %258 = vector.extract_strided_slice %248 {offsets = [3, 0], sizes = [1, 8], strides = [1, 1]} : vector<5x8xf32> to vector<1x8xf32>
    %259 = vector.broadcast %258 : vector<1x8xf32> to vector<5x8xf32>
    %260 = arith.mulf %7, %259 : vector<5x8xf32>
    %261 = vector.extract_strided_slice %248 {offsets = [4, 0], sizes = [1, 8], strides = [1, 1]} : vector<5x8xf32> to vector<1x8xf32>
    %262 = vector.broadcast %261 : vector<1x8xf32> to vector<5x8xf32>
    %263 = arith.mulf %8, %262 : vector<5x8xf32>
    %264 = arith.addf %105, %251 : vector<5x8xf32>
    %265 = arith.addf %254, %257 : vector<5x8xf32>
    %266 = arith.addf %260, %263 : vector<5x8xf32>
    %267 = arith.addf %264, %265 : vector<5x8xf32>
    %268 = arith.addf %267, %266 : vector<5x8xf32>
    %cst_37 = arith.constant 0.000000e+00 : f32
    %269 = vector.broadcast %cst_37 : f32 to vector<5x8xf32>
    %270 = arith.maximumf %268, %269 : vector<5x8xf32>
    %271 = vector.extract_strided_slice %270 {offsets = [0, 0], sizes = [1, 8], strides = [1, 1]} : vector<5x8xf32> to vector<1x8xf32>
    %272 = vector.broadcast %271 : vector<1x8xf32> to vector<5x8xf32>
    %273 = arith.mulf %4, %272 : vector<5x8xf32>
    %274 = vector.extract_strided_slice %270 {offsets = [1, 0], sizes = [1, 8], strides = [1, 1]} : vector<5x8xf32> to vector<1x8xf32>
    %275 = vector.broadcast %274 : vector<1x8xf32> to vector<5x8xf32>
    %276 = arith.mulf %5, %275 : vector<5x8xf32>
    %277 = vector.extract_strided_slice %270 {offsets = [2, 0], sizes = [1, 8], strides = [1, 1]} : vector<5x8xf32> to vector<1x8xf32>
    %278 = vector.broadcast %277 : vector<1x8xf32> to vector<5x8xf32>
    %279 = arith.mulf %6, %278 : vector<5x8xf32>
    %280 = vector.extract_strided_slice %270 {offsets = [3, 0], sizes = [1, 8], strides = [1, 1]} : vector<5x8xf32> to vector<1x8xf32>
    %281 = vector.broadcast %280 : vector<1x8xf32> to vector<5x8xf32>
    %282 = arith.mulf %7, %281 : vector<5x8xf32>
    %283 = vector.extract_strided_slice %270 {offsets = [4, 0], sizes = [1, 8], strides = [1, 1]} : vector<5x8xf32> to vector<1x8xf32>
    %284 = vector.broadcast %283 : vector<1x8xf32> to vector<5x8xf32>
    %285 = arith.mulf %8, %284 : vector<5x8xf32>
    %286 = arith.addf %123, %273 : vector<5x8xf32>
    %287 = arith.addf %276, %279 : vector<5x8xf32>
    %288 = arith.addf %282, %285 : vector<5x8xf32>
    %289 = arith.addf %286, %287 : vector<5x8xf32>
    %290 = arith.addf %289, %288 : vector<5x8xf32>
    %cst_38 = arith.constant 0.000000e+00 : f32
    %291 = vector.broadcast %cst_38 : f32 to vector<5x8xf32>
    %292 = arith.maximumf %290, %291 : vector<5x8xf32>
    %293 = vector.extract_strided_slice %292 {offsets = [0, 0], sizes = [1, 8], strides = [1, 1]} : vector<5x8xf32> to vector<1x8xf32>
    %294 = vector.broadcast %293 : vector<1x8xf32> to vector<5x8xf32>
    %295 = arith.mulf %4, %294 : vector<5x8xf32>
    %296 = vector.extract_strided_slice %292 {offsets = [1, 0], sizes = [1, 8], strides = [1, 1]} : vector<5x8xf32> to vector<1x8xf32>
    %297 = vector.broadcast %296 : vector<1x8xf32> to vector<5x8xf32>
    %298 = arith.mulf %5, %297 : vector<5x8xf32>
    %299 = vector.extract_strided_slice %292 {offsets = [2, 0], sizes = [1, 8], strides = [1, 1]} : vector<5x8xf32> to vector<1x8xf32>
    %300 = vector.broadcast %299 : vector<1x8xf32> to vector<5x8xf32>
    %301 = arith.mulf %6, %300 : vector<5x8xf32>
    %302 = vector.extract_strided_slice %292 {offsets = [3, 0], sizes = [1, 8], strides = [1, 1]} : vector<5x8xf32> to vector<1x8xf32>
    %303 = vector.broadcast %302 : vector<1x8xf32> to vector<5x8xf32>
    %304 = arith.mulf %7, %303 : vector<5x8xf32>
    %305 = vector.extract_strided_slice %292 {offsets = [4, 0], sizes = [1, 8], strides = [1, 1]} : vector<5x8xf32> to vector<1x8xf32>
    %306 = vector.broadcast %305 : vector<1x8xf32> to vector<5x8xf32>
    %307 = arith.mulf %8, %306 : vector<5x8xf32>
    %308 = arith.addf %141, %295 : vector<5x8xf32>
    %309 = arith.addf %298, %301 : vector<5x8xf32>
    %310 = arith.addf %304, %307 : vector<5x8xf32>
    %311 = arith.addf %308, %309 : vector<5x8xf32>
    %312 = arith.addf %311, %310 : vector<5x8xf32>
    %cst_39 = arith.constant 0.000000e+00 : f32
    %313 = vector.broadcast %cst_39 : f32 to vector<5x8xf32>
    %314 = arith.maximumf %312, %313 : vector<5x8xf32>
    %315 = vector.extract_strided_slice %314 {offsets = [0, 0], sizes = [1, 8], strides = [1, 1]} : vector<5x8xf32> to vector<1x8xf32>
    %316 = vector.broadcast %315 : vector<1x8xf32> to vector<5x8xf32>
    %317 = arith.mulf %4, %316 : vector<5x8xf32>
    %318 = vector.extract_strided_slice %314 {offsets = [1, 0], sizes = [1, 8], strides = [1, 1]} : vector<5x8xf32> to vector<1x8xf32>
    %319 = vector.broadcast %318 : vector<1x8xf32> to vector<5x8xf32>
    %320 = arith.mulf %5, %319 : vector<5x8xf32>
    %321 = vector.extract_strided_slice %314 {offsets = [2, 0], sizes = [1, 8], strides = [1, 1]} : vector<5x8xf32> to vector<1x8xf32>
    %322 = vector.broadcast %321 : vector<1x8xf32> to vector<5x8xf32>
    %323 = arith.mulf %6, %322 : vector<5x8xf32>
    %324 = vector.extract_strided_slice %314 {offsets = [3, 0], sizes = [1, 8], strides = [1, 1]} : vector<5x8xf32> to vector<1x8xf32>
    %325 = vector.broadcast %324 : vector<1x8xf32> to vector<5x8xf32>
    %326 = arith.mulf %7, %325 : vector<5x8xf32>
    %327 = vector.extract_strided_slice %314 {offsets = [4, 0], sizes = [1, 8], strides = [1, 1]} : vector<5x8xf32> to vector<1x8xf32>
    %328 = vector.broadcast %327 : vector<1x8xf32> to vector<5x8xf32>
    %329 = arith.mulf %8, %328 : vector<5x8xf32>
    %330 = arith.addf %159, %317 : vector<5x8xf32>
    %331 = arith.addf %320, %323 : vector<5x8xf32>
    %332 = arith.addf %326, %329 : vector<5x8xf32>
    %333 = arith.addf %330, %331 : vector<5x8xf32>
    %334 = arith.addf %333, %332 : vector<5x8xf32>
    %cst_40 = arith.constant 0.000000e+00 : f32
    %335 = vector.broadcast %cst_40 : f32 to vector<5x8xf32>
    %336 = arith.maximumf %334, %335 : vector<5x8xf32>
    %337 = vector.extract_strided_slice %336 {offsets = [0, 0], sizes = [1, 8], strides = [1, 1]} : vector<5x8xf32> to vector<1x8xf32>
    %338 = vector.broadcast %337 : vector<1x8xf32> to vector<3x8xf32>
    %339 = arith.mulf %10, %338 : vector<3x8xf32>
    %340 = vector.extract_strided_slice %336 {offsets = [1, 0], sizes = [1, 8], strides = [1, 1]} : vector<5x8xf32> to vector<1x8xf32>
    %341 = vector.broadcast %340 : vector<1x8xf32> to vector<3x8xf32>
    %342 = arith.mulf %11, %341 : vector<3x8xf32>
    %343 = vector.extract_strided_slice %336 {offsets = [2, 0], sizes = [1, 8], strides = [1, 1]} : vector<5x8xf32> to vector<1x8xf32>
    %344 = vector.broadcast %343 : vector<1x8xf32> to vector<3x8xf32>
    %345 = arith.mulf %12, %344 : vector<3x8xf32>
    %346 = vector.extract_strided_slice %336 {offsets = [3, 0], sizes = [1, 8], strides = [1, 1]} : vector<5x8xf32> to vector<1x8xf32>
    %347 = vector.broadcast %346 : vector<1x8xf32> to vector<3x8xf32>
    %348 = arith.mulf %13, %347 : vector<3x8xf32>
    %349 = vector.extract_strided_slice %336 {offsets = [4, 0], sizes = [1, 8], strides = [1, 1]} : vector<5x8xf32> to vector<1x8xf32>
    %350 = vector.broadcast %349 : vector<1x8xf32> to vector<3x8xf32>
    %351 = arith.mulf %14, %350 : vector<3x8xf32>
    %352 = arith.addf %15, %339 : vector<3x8xf32>
    %353 = arith.addf %342, %345 : vector<3x8xf32>
    %354 = arith.addf %348, %351 : vector<3x8xf32>
    %355 = arith.addf %352, %353 : vector<3x8xf32>
    %356 = arith.addf %355, %354 : vector<3x8xf32>
    %357 = math.tanh %356 : vector<3x8xf32>
    %c0_41 = arith.constant 0 : index
    %c0_42 = arith.constant 0 : index
    %358 = vector.load %arg2[%c0_41, %c0_42] : memref<3x8xf32, #tpu.memory_space<vmem>>, vector<3x8xf32>
    tpu.vector_store %arg2[%c0_41, %c0_42], %357 {strides = array<i32>} : memref<3x8xf32, #tpu.memory_space<vmem>>, vector<3x8xf32>,
    return
  }
}

</mosaic_0001>

<bundles_post_ra>
// kernel: net_r1l_forward.1
= control target key start
LH: loop header
LB: loop body
LE: loop exit
PB: predicated region body
PF: predicated region fallthrough
CT: control target
= control target key end

     0   :  { %7 = vsyncpa [#allocation3], 0  ;;  %v29_v0 = vlaneseq  ;;  %s544_s28 = smov [#allocation2]   ;;  %vm494_vm0 = vcmask 59392   ;;  %s839_s0 = inlined_call_operand.vmem [shape: f32[8,4,8], index: 0, kind: input, shape index: {}]   ;;  %s840_s1 = inlined_call_operand.vmem [shape: f32[128,8], index: 1, kind: input, shape index: {}]   ;;  %s841_s2 = inlined_call_operand.hbm [shape: f32[3,8], index: 2, kind: output, shape index: {}]  }
   0x1   :  { %v28_v2 = vld [vmem:[%s839_s0] sm:$0xf]  ;;  %v585_v10 = vld [vmem:[%s840_s1 + $0x8] sm:$0x1f]  ;;  %v590_v11 = vld [vmem:[%s840_s1 + $0x10] sm:$0x1f] }
   0x2   :  { %v560_v1 = vshrl.u32 %v29_v0, 7  ;;  %v580_v9 = vld [vmem:[%s840_s1] sm:$0x1f]  ;;  %v601_v16 = vld [vmem:[%s840_s1 + $0x48] sm:$0x1f]  ;;  %s502_s29 = sshll.u32 %s544_s28, 4  ;;  %s503_s29 = int_to_ptr.vmem [resolvable:$true] %s502_s29 }
   0x3   :  { %v510_v17 = vld [vmem:[%s839_s0 + $0x4] sm:$0xf]  ;;  %v611_v21 = vld [vmem:[%s840_s1 + $0x18] sm:$0x1f]  ;;  %v622_v24 = vld [vmem:[%s840_s1 + $0x28] sm:$0x1f]  ;;  %p525_p1 = scmp.lt.s32.totalorder %s503_s29, %s503_s29 }
   0x4   :  { %v566_v3 = vsub.s32 0, %v560_v1  ;;  %v569_v4 = vsub.s32 1, %v560_v1  ;;  %v572_v5 = vsub.s32 2, %v560_v1  ;;  %v596_v15 = vsub.s32 3, %v560_v1  ;;  %v616_v22 = vld [vmem:[%s840_s1 + $0x20] sm:$0x1f] }
   0x5   :  { %v627_v25 = vld [vmem:[%s840_s1 + $0x30] sm:$0x1f]  ;;  %v515_v28 = vld [vmem:[%s839_s0 + $0x18] sm:$0xf]  ;;  %v643_v32 = vld [vmem:[%s840_s1 + $0x40] sm:$0x1f] }
   0x6   :  { %v32_v6 = vrot.slane %v28_v2, %v566_v3  ;;  %v37_v7 = vrot.slane %v28_v2, %v569_v4  ;;  %v42_v8 = vrot.slane %v28_v2, %v572_v5  ;;  %v47_v18 = vrot.slane %v28_v2, %v596_v15  ;;  %v637_v29 = vld [vmem:[%s840_s1 + $0x38] sm:$0x1f]  ;;  %v511_v59 = vld [vmem:[%s839_s0 + $0x8] sm:$0xf] }
   0x7   :  { %v58_v23 = vrot.slane %v510_v17, %v566_v3  ;;  %v63_v26 = vrot.slane %v510_v17, %v569_v4  ;;  %v68_v27 = vrot.slane %v510_v17, %v572_v5  ;;  %v235_v33 = vmul.f32 0.0, %v616_v22  ;;  %v516_v36 = vld [vmem:[%s839_s0 + $0x1c] sm:$0xf] }
   0x8   :  { %v33_v12 = vmul.f32 %v32_v6, %v580_v9  ;;  %v38_v13 = vmul.f32 %v37_v7, %v585_v10  ;;  %v43_v14 = vmul.f32 %v42_v8, %v590_v11  ;;  %v48_v30 = vmul.f32 %v47_v18, %v611_v21 }
   0x9   :  { %v59_v34 = vmul.f32 %v58_v23, %v580_v9  ;;  %v188_v35 = vrot.slane %v515_v28, %v566_v3  ;;  %v236_v37 = vmul.f32 0.0, %v622_v24  ;;  %v237_v38 = vmul.f32 0.0, %v627_v25 }
   0xa   :  { %v49_v19 = vadd.f32 %v33_v12, %v601_v16  ;;  %v50_v20 = vadd.f32 %v43_v14, %v38_v13  ;;  %v64_v39 = vmul.f32 %v63_v26, %v585_v10  ;;  %v69_v40 = vmul.f32 %v68_v27, %v590_v11 }
   0xb   :  { %v193_v41 = vrot.slane %v515_v28, %v569_v4  ;;  %v238_v42 = vmul.f32 0.0, %v637_v29  ;;  %v189_v44 = vmul.f32 %v188_v35, %v580_v9  ;;  %v198_v45 = vrot.slane %v515_v28, %v572_v5 }
   0xc   :  { %v51_v31 = vadd.f32 %v50_v20, %v49_v19  ;;  %v239_v46 = vmul.f32 0.0, %v643_v32  ;;  %v73_v47 = vrot.slane %v510_v17, %v596_v15  ;;  %v203_v49 = vrot.slane %v515_v28, %v596_v15 }
   0xd   :  { %v194_v48 = vmul.f32 %v193_v41, %v585_v10  ;;  %v214_v50 = vrot.slane %v516_v36, %v566_v3  ;;  %v75_v51 = vadd.f32 %v59_v34, %v601_v16  ;;  %v199_v52 = vmul.f32 %v198_v45, %v590_v11 }
   0xe   :  { %v52_v43 = vadd.f32 %v51_v31, %v48_v30  ;;  %v205_v53 = vadd.f32 %v189_v44, %v601_v16  ;;  %v219_v54 = vrot.slane %v516_v36, %v569_v4  ;;  %v76_v55 = vadd.f32 %v69_v40, %v64_v39 }
   0xf   :  { %v204_v56 = vmul.f32 %v203_v49, %v611_v21  ;;  %v215_v57 = vmul.f32 %v214_v50, %v580_v9  ;;  %v224_v58 = vrot.slane %v516_v36, %v572_v5  ;;  %v206_v60 = vadd.f32 %v199_v52, %v194_v48  ;;  %v512_v49 = vld [vmem:[%s839_s0 + $0xc] sm:$0xf] }
  0x10   :  { %v220_v61 = vmul.f32 %v219_v54, %v585_v10  ;;  %v229_v62 = vrot.slane %v516_v36, %v596_v15  ;;  %v240_v63 = vadd.f32 %v235_v33, %v52_v43  ;;  %v241_v6 = vadd.f32 %v237_v38, %v236_v37 }
  0x11   :  { %v225_v0 = vmul.f32 %v224_v58, %v590_v11  ;;  %v231_v2 = vadd.f32 %v215_v57, %v601_v16  ;;  %v74_v7 = vmul.f32 %v73_v47, %v611_v21  ;;  %v207_v8 = vadd.f32 %v206_v60, %v205_v53 }
  0x12   :  { %v242_v12 = vadd.f32 %v239_v46, %v238_v42  ;;  %v84_v13 = vrot.slane %v511_v59, %v566_v3  ;;  %v230_v14 = vmul.f32 %v229_v62, %v611_v21  ;;  %v243_v18 = vadd.f32 %v241_v6, %v240_v63 }
  0x13   :  { %v232_v17 = vadd.f32 %v225_v0, %v220_v61  ;;  %v77_v19 = vadd.f32 %v76_v55, %v75_v51  ;;  %v89_v20 = vrot.slane %v511_v59, %v569_v4  ;;  %v94_v23 = vrot.slane %v511_v59, %v572_v5 }
  0x14   :  { %v683_v26 = vadd.f32 %v207_v8, %v204_v56  ;;  %v244_v28 = vadd.f32 %v243_v18, %v242_v12  ;;  %v686_v30 = vsub.s32 4, %v560_v1  ;;  %v85_v35 = vmul.f32 %v84_v13, %v580_v9 }
  0x15   :  { %v233_v27 = vadd.f32 %v232_v17, %v231_v2  ;;  %v78_v34 = vadd.f32 %v77_v19, %v74_v7  ;;  %v90_v36 = vmul.f32 %v89_v20, %v585_v10  ;;  %v95_v37 = vmul.f32 %v94_v23, %v590_v11 }
  0x16   :  { %v245_v33 = vmax.f32 %v244_v28, 0.0  ;;  %v99_v46 = vrot.slane %v511_v59, %v596_v15  ;;  %v101_v47 = vadd.f32 %v85_v35, %v601_v16  ;;  %v110_v54 = vrot.slane %v512_v49, %v566_v3  ;;  %v513_v28 = vld [vmem:[%s839_s0 + $0x10] sm:$0xf] }
  0x17   :  { %v688_v31 = vadd.f32 %v233_v27, %v230_v14  ;;  %v102_v48 = vadd.f32 %v95_v37, %v90_v36  ;;  %v115_v58 = vrot.slane %v512_v49, %v569_v4  ;;  %v120_v59 = vrot.slane %v512_v49, %v572_v5 }
  0x18   :  { %v249_v38 = vrot.slane %v245_v33, %v566_v3  ;;  %v254_v39 = vrot.slane %v245_v33, %v569_v4  ;;  %v259_v40 = vrot.slane %v245_v33, %v572_v5  ;;  %v264_v41 = vrot.slane %v245_v33, %v596_v15 }
  0x19   :  { %v269_v1 = vrot.slane %v245_v33, %v686_v30  ;;  %v100_v56 = vmul.f32 %v99_v46, %v611_v21  ;;  %v103_v57 = vadd.f32 %v102_v48, %v101_v47  ;;  %v111_v63 = vmul.f32 %v110_v54, %v580_v9 }
  0x1a   :  { %v250_v42 = vmul.f32 %v249_v38, %v616_v22  ;;  %v255_v43 = vmul.f32 %v254_v39, %v622_v24  ;;  %v260_v44 = vmul.f32 %v259_v40, %v627_v25  ;;  %v265_v45 = vmul.f32 %v264_v41, %v637_v29 }
  0x1b   :  { %v270_v50 = vmul.f32 %v269_v1, %v643_v32  ;;  %v104_v62 = vadd.f32 %v103_v57, %v100_v56  ;;  %v116_v0 = vmul.f32 %v115_v58, %v585_v10  ;;  %v121_v2 = vmul.f32 %v120_v59, %v590_v11 }
  0x1c   :  { %v271_v51 = vadd.f32 %v250_v42, %v78_v34  ;;  %v272_v52 = vadd.f32 %v260_v44, %v255_v43  ;;  %v125_v20 = vrot.slane %v512_v49, %v596_v15  ;;  %v127_v23 = vadd.f32 %v111_v63, %v601_v16 }
  0x1d   :  { %v273_v53 = vadd.f32 %v270_v50, %v265_v45  ;;  %v128_v27 = vadd.f32 %v121_v2, %v116_v0  ;;  %v136_v37 = vrot.slane %v513_v28, %v566_v3  ;;  %v141_v41 = vrot.slane %v513_v28, %v569_v4 }
  0x1e   :  { %v274_v55 = vadd.f32 %v272_v52, %v271_v51  ;;  %v126_v39 = vmul.f32 %v125_v20, %v611_v21  ;;  %v146_v1 = vrot.slane %v513_v28, %v572_v5  ;;  %v151_v57 = vrot.slane %v513_v28, %v596_v15 }
  0x1f   :  { %v129_v40 = vadd.f32 %v128_v27, %v127_v23  ;;  %v137_v45 = vmul.f32 %v136_v37, %v580_v9  ;;  %v142_v46 = vmul.f32 %v141_v41, %v585_v10 }
  0x20   :  { %v275_v60 = vadd.f32 %v274_v55, %v273_v53  ;;  %v147_v47 = vmul.f32 %v146_v1, %v590_v11 }
  0x21   :  { %v130_v44 = vadd.f32 %v129_v40, %v126_v39  ;;  %v153_v58 = vadd.f32 %v137_v45, %v601_v16 }
  0x22   :  { %v276_v61 = vmax.f32 %v275_v60, 0.0  ;;  %v154_v59 = vadd.f32 %v147_v47, %v142_v46  ;;  %v514_v60 = vld [vmem:[%s839_s0 + $0x14] sm:$0xf] }
  0x23   :  { %v162_v2 = vrot.slane %v514_v60, %v566_v3 }
  0x24   :  { %v280_v6 = vrot.slane %v276_v61, %v566_v3  ;;  %v285_v7 = vrot.slane %v276_v61, %v569_v4  ;;  %v290_v8 = vrot.slane %v276_v61, %v572_v5  ;;  %v295_v12 = vrot.slane %v276_v61, %v596_v15 }
  0x25   :  { %v300_v13 = vrot.slane %v276_v61, %v686_v30 }
  0x26   :  { %v281_v14 = vmul.f32 %v280_v6, %v616_v22  ;;  %v286_v17 = vmul.f32 %v285_v7, %v622_v24  ;;  %v291_v18 = vmul.f32 %v290_v8, %v627_v25  ;;  %v296_v19 = vmul.f32 %v295_v12, %v637_v29 }
  0x27   :  { %v301_v33 = vmul.f32 %v300_v13, %v643_v32  ;;  %v152_v7 = vmul.f32 %v151_v57, %v611_v21  ;;  %v155_v8 = vadd.f32 %v154_v59, %v153_v58  ;;  %v167_v12 = vrot.slane %v514_v60, %v569_v4 }
  0x28   :  { %v302_v34 = vadd.f32 %v281_v14, %v104_v62  ;;  %v303_v35 = vadd.f32 %v291_v18, %v286_v17  ;;  %v172_v13 = vrot.slane %v514_v60, %v572_v5 }
  0x29   :  { %v304_v36 = vadd.f32 %v301_v33, %v296_v19  ;;  %v156_v18 = vadd.f32 %v155_v8, %v152_v7  ;;  %v163_v19 = vmul.f32 %v162_v2, %v580_v9  ;;  %v168_v20 = vmul.f32 %v167_v12, %v585_v10 }
  0x2a   :  { %v305_v38 = vadd.f32 %v303_v35, %v302_v34  ;;  %v173_v23 = vmul.f32 %v172_v13, %v590_v11  ;;  %v177_v11 = vrot.slane %v514_v60, %v596_v15 }
  0x2c   :  { %v306_v42 = vadd.f32 %v305_v38, %v304_v36  ;;  %v179_v38 = vadd.f32 %v163_v19, %v601_v16  ;;  %v180_v39 = vadd.f32 %v173_v23, %v168_v20 }
  0x2e   :  { %v307_v43 = vmax.f32 %v306_v42, 0.0  ;;  %v181_v45 = vadd.f32 %v180_v39, %v179_v38 }
  0x30   :  { %v311_v48 = vrot.slane %v307_v43, %v566_v3  ;;  %v316_v49 = vrot.slane %v307_v43, %v569_v4  ;;  %v321_v50 = vrot.slane %v307_v43, %v572_v5  ;;  %v326_v51 = vrot.slane %v307_v43, %v596_v15 }
  0x31   :  { %v331_v52 = vrot.slane %v307_v43, %v686_v30 }
  0x32   :  { %v312_v53 = vmul.f32 %v311_v48, %v616_v22  ;;  %v317_v54 = vmul.f32 %v316_v49, %v622_v24  ;;  %v322_v55 = vmul.f32 %v321_v50, %v627_v25  ;;  %v327_v56 = vmul.f32 %v326_v51, %v637_v29 }
  0x33   :  { %v332_v61 = vmul.f32 %v331_v52, %v643_v32 }
  0x34   :  { %v333_v62 = vadd.f32 %v312_v53, %v130_v44  ;;  %v334_v63 = vadd.f32 %v322_v55, %v317_v54  ;;  %v178_v44 = vmul.f32 %v177_v11, %v611_v21 }
  0x35   :  { %v335_v0 = vadd.f32 %v332_v61, %v327_v56 }
  0x36   :  { %v336_v6 = vadd.f32 %v334_v63, %v333_v62  ;;  %v182_v48 = vadd.f32 %v181_v45, %v178_v44 }
  0x38   :  { %v337_v14 = vadd.f32 %v336_v6, %v335_v0 }
  0x3a   :  { %v338_v17 = vmax.f32 %v337_v14, 0.0 }
  0x3c   :  { %v342_v27 = vrot.slane %v338_v17, %v566_v3  ;;  %v347_v28 = vrot.slane %v338_v17, %v569_v4  ;;  %v352_v33 = vrot.slane %v338_v17, %v572_v5  ;;  %v357_v34 = vrot.slane %v338_v17, %v596_v15 }
  0x3d   :  { %v362_v35 = vrot.slane %v338_v17, %v686_v30 }
  0x3e   :  { %v343_v36 = vmul.f32 %v342_v27, %v616_v22  ;;  %v348_v37 = vmul.f32 %v347_v28, %v622_v24  ;;  %v353_v9 = vmul.f32 %v352_v33, %v627_v25  ;;  %v358_v10 = vmul.f32 %v357_v34, %v637_v29 }
  0x3f   :  { %v363_v40 = vmul.f32 %v362_v35, %v643_v32 }
  0x40   :  { %v364_v41 = vadd.f32 %v343_v36, %v156_v18  ;;  %v365_v1 = vadd.f32 %v353_v9, %v348_v37 }
  0x41   :  { %v366_v42 = vadd.f32 %v363_v40, %v358_v10 }
  0x42   :  { %v367_v43 = vadd.f32 %v365_v1, %v364_v41 }
  0x44   :  { %v368_v46 = vadd.f32 %v367_v43, %v366_v42  ;;  %v22_v43 = vld [vmem:[%s840_s1 + $0x50] sm:$0x7] }
  0x46   :  { %v369_v47 = vmax.f32 %v368_v46, 0.0 }
  0x48   :  { %v373_v49 = vrot.slane %v369_v47, %v566_v3  ;;  %v378_v50 = vrot.slane %v369_v47, %v569_v4  ;;  %v383_v51 = vrot.slane %v369_v47, %v572_v5  ;;  %v388_v16 = vrot.slane %v369_v47, %v596_v15 }
  0x49   :  { %v393_v52 = vrot.slane %v369_v47, %v686_v30  ;;  %v27_v47 = vld [vmem:[%s840_s1 + $0x78] sm:$0x7] }
  0x4a   :  { %v374_v53 = vmul.f32 %v373_v49, %v616_v22  ;;  %v379_v54 = vmul.f32 %v378_v50, %v622_v24  ;;  %v384_v21 = vmul.f32 %v383_v51, %v627_v25  ;;  %v389_v55 = vmul.f32 %v388_v16, %v637_v29 }
  0x4b   :  { %v394_v56 = vmul.f32 %v393_v52, %v643_v32 }
  0x4c   :  { %v395_v57 = vadd.f32 %v374_v53, %v182_v48  ;;  %v396_v58 = vadd.f32 %v384_v21, %v379_v54 }
  0x4d   :  { %v397_v59 = vadd.f32 %v394_v56, %v389_v55 }
  0x4e   :  { %v398_v60 = vadd.f32 %v396_v58, %v395_v57 }
  0x50   :  { %v399_v61 = vadd.f32 %v398_v60, %v397_v59 }
  0x52   :  { %v400_v62 = vmax.f32 %v399_v61, 0.0 }
  0x54   :  { %v404_v63 = vrot.slane %v400_v62, %v566_v3  ;;  %v409_v0 = vrot.slane %v400_v62, %v569_v4  ;;  %v414_v2 = vrot.slane %v400_v62, %v572_v5  ;;  %v419_v6 = vrot.slane %v400_v62, %v596_v15 }
  0x55   :  { %v424_v7 = vrot.slane %v400_v62, %v686_v30 }
  0x56   :  { %v405_v8 = vmul.f32 %v404_v63, %v616_v22  ;;  %v410_v12 = vmul.f32 %v409_v0, %v622_v24  ;;  %v415_v13 = vmul.f32 %v414_v2, %v627_v25  ;;  %v420_v14 = vmul.f32 %v419_v6, %v637_v29 }
  0x57   :  { %v425_v17 = vmul.f32 %v424_v7, %v643_v32 }
  0x58   :  { %v426_v18 = vadd.f32 %v405_v8, %v683_v26  ;;  %v427_v19 = vadd.f32 %v415_v13, %v410_v12 }
  0x59   :  { %v428_v20 = vadd.f32 %v425_v17, %v420_v14 }
  0x5a   :  { %v429_v23 = vadd.f32 %v427_v19, %v426_v18 }
  0x5c   :  { %v430_v27 = vadd.f32 %v429_v23, %v428_v20 }
  0x5e   :  { %v431_v28 = vmax.f32 %v430_v27, 0.0 }
  0x60   :  { %v435_v33 = vrot.slane %v431_v28, %v566_v3  ;;  %v440_v34 = vrot.slane %v431_v28, %v569_v4  ;;  %v445_v35 = vrot.slane %v431_v28, %v572_v5  ;;  %v450_v36 = vrot.slane %v431_v28, %v596_v15 }
  0x61   :  { %v455_v37 = vrot.slane %v431_v28, %v686_v30 }
  0x62   :  { %v436_v9 = vmul.f32 %v435_v33, %v616_v22  ;;  %v441_v10 = vmul.f32 %v440_v34, %v622_v24  ;;  %v446_v26 = vmul.f32 %v445_v35, %v627_v25  ;;  %v451_v11 = vmul.f32 %v450_v36, %v637_v29  ;;  %v23_v22 = vld [vmem:[%s840_s1 + $0x58] sm:$0x7]  ;;  %v24_v24 = vld [vmem:[%s840_s1 + $0x60] sm:$0x7]  ;;  %v25_v25 = vld [vmem:[%s840_s1 + $0x68] sm:$0x7] }
  0x63   :  { %v456_v38 = vmul.f32 %v455_v37, %v643_v32  ;;  %v26_v29 = vld [vmem:[%s840_s1 + $0x70] sm:$0x7]  ;;  %s520_s1 = scalar_lea.vmem %s503_s29, 64 }
  0x64   :  { %v457_v39 = vadd.f32 %v436_v9, %v688_v31  ;;  %v458_v40 = vadd.f32 %v446_v26, %v441_v10  ;;  %p521_p0 = scmp.ne.s32.totalorder %s503_s29, %s520_s1  ;;  %p526_p2 = scmp.lt.s32.totalorder %s520_s1, %s520_s1 }
  0x65   :  { %v459_v41 = vadd.f32 %v456_v38, %v451_v11 }
  0x66   :  { %v460_v1 = vadd.f32 %v458_v40, %v457_v39  ;;  %p527_p3 = por %p526_p2, %p525_p1 }
  0x68   :  { %v461_v42 = vadd.f32 %v460_v1, %v459_v41  ;;  %p528_p4 = pnand %p527_p3, %p521_p0 }
  0x6a   :  { %v462_v44 = vmax.f32 %v461_v42, 0.0 }
  0x6c   :  { %v466_v32 = vrot.slane %v462_v44, %v566_v3  ;;  %v471_v31 = vrot.slane %v462_v44, %v569_v4  ;;  %v476_v45 = vrot.slane %v462_v44, %v572_v5  ;;  %v481_v46 = vrot.slane %v462_v44, %v596_v15 }
  0x6d   :  { %v486_v48 = vrot.slane %v462_v44, %v686_v30 }
  0x6e   :  { %v467_v49 = vmul.f32 %v466_v32, %v22_v43  ;;  %v472_v50 = vmul.f32 %v471_v31, %v23_v22  ;;  %v477_v51 = vmul.f32 %v476_v45, %v24_v24  ;;  %v482_v16 = vmul.f32 %v481_v46, %v25_v25 }
  0x6f   :  { %v487_v52 = vmul.f32 %v486_v48, %v26_v29 }
  0x70   :  { %v488_v53 = vadd.f32 %v467_v49, %v27_v47  ;;  %v489_v54 = vadd.f32 %v477_v51, %v472_v50 }
  0x71   :  { %v490_v3 = vadd.f32 %v487_v52, %v482_v16 }
  0x72   :  { %v491_v21 = vadd.f32 %v489_v54, %v488_v53 }
  0x74   :  { %v492_v4 = vadd.f32 %v491_v21, %v490_v3 }
  0x76   :  { %518 = vtanh.f32 %v492_v4 }
  0x80   :  { %v519_v5 = vpop.eup %518 }
  0x81   :  { %495 = vst.msk [vmem:[#allocation2] sm:$0x7] %vm494_vm0, %v519_v5 }
  0x82   :  { %531 = shalt.err (!%p528_p4)
}
  0x83   :  { %s532_s4 = scalar_lea.hbm %s841_s2, 64 }
  0x84   :  { %p533_p5 = scmp.ne.s32.totalorder %s841_s2, %s532_s4  ;;  %p536_p6 = scmp.lt.u32.totalorder %s532_s4, %s841_s2 }
  0x86   :  { %p538_p7 = pnand %p536_p6, %p533_p5 }
  0x88   :  { %541 = shalt.err (!%p538_p7)
}
  0x89   :  { %505 = dma.vmem_to_hbm [thread:$0]  %s503_s29, 64, %s841_s2, [#allocation3]  }
  0x8a   :  { %542 = dma.done.wait [#allocation3], 64  }
  0x8b   :  { %543 = vsyncadd [#allocation3], 4294967232 }
  0x8c   :  { %509 = vsyncpa [#allocation3], 1 }

</bundles_post_ra>
